<compile_context>
chip_gen: v7x
topology: tpu7x:2x2x1
jax: 0.10.0
libtpu: 0.0.40
codegen_flags: <defaults>
</compile_context>

<pallas_src>
import functools

import jax
import jax.numpy as jnp
from jax.experimental import pallas as pl
from jax.experimental.pallas import tpu as pltpu

_COS_EPS = 1e-8               # F.cosine_similarity default eps (module's self.eps unused there)
_EPS2 = _COS_EPS * _COS_EPS   # max(||x||, eps) == sqrt(max(||x||^2, eps^2))


def _log_prob(cos, mask):
    """Per-class log-prob: log(sum_b exp(cos)*mask) - log(sum_b exp(cos)).

    cos, mask: [bs, tn]; the reduction is over the batch (sublane) axis,
    matching the PyTorch reduction over dim=-1 of the [n, bs] view.
    NOTE: assumes `mask` is a binary {0,1} pos_mask, so
    exp(cos*mask)*mask == exp(cos)*mask (and cos - max <= 0, so no inf*0).
    """
    cos_max = jnp.max(cos, axis=0, keepdims=True)            # [1, tn]
    e = jnp.exp(cos - cos_max)                                # single EUP pass
    neg = jnp.sum(e, axis=0, keepdims=True)                   # [1, tn]
    neg = jnp.log(jnp.where(neg <= 0.0, 1.0, neg))
    pos = jnp.sum(e * mask, axis=0, keepdims=True)            # [1, tn]
    pos = jnp.log(jnp.where(pos <= 0.0, 1.0, pos))
    return pos - neg


def _sem2pro_kernel_dim_major(sem_ref, proto_ref, tgt_ref, out_ref, *, inv_temp):
    """Lane axis = classes (dense), sublane axis = dim.  Used when dim < 128."""
    s = sem_ref[...].astype(jnp.float32)      # [bs, dim, tn]  single upcast per tile
    p = proto_ref[...].astype(jnp.float32)    # [dim, tn]
    mask = tgt_ref[...].astype(jnp.float32)   # [bs, tn]

    # Normalize prototypes once per class tile (not bs times), clamping each
    # norm separately like torch.nn.functional.cosine_similarity.
    p_sq = jnp.sum(p * p, axis=0, keepdims=True)                    # [1, tn]
    p_n = p * jax.lax.rsqrt(jnp.maximum(p_sq, _EPS2))               # [dim, tn]

    dot = jnp.sum(s * p_n[None, :, :], axis=1)                      # [bs, tn]
    s_sq = jnp.sum(s * s, axis=1)                                   # [bs, tn]
    cos = dot * jax.lax.rsqrt(jnp.maximum(s_sq, _EPS2)) * inv_temp

    out_ref[...] = _log_prob(cos, mask)                             # lane-dense (1, tn)


def _sem2pro_kernel_class_major(sem_ref, proto_ref, tgt_ref, out_ref, *, inv_temp):
    """Lane axis = dim (>= 128 -> already lane-dense).  No transpose needed."""
    s = sem_ref[...].astype(jnp.float32)      # [bs, tn, dim]
    p = proto_ref[...].astype(jnp.float32)    # [tn, dim]
    mask = tgt_ref[...].astype(jnp.float32)   # [bs, tn]

    p_sq = jnp.sum(p * p, axis=-1, keepdims=True)                   # [tn, 1]
    p_n = p * jax.lax.rsqrt(jnp.maximum(p_sq, _EPS2))               # [tn, dim]

    dot = jnp.sum(s * p_n[None, :, :], axis=-1)                     # [bs, tn]
    s_sq = jnp.sum(s * s, axis=-1)                                  # [bs, tn]
    cos = dot * jax.lax.rsqrt(jnp.maximum(s_sq, _EPS2)) * inv_temp

    out_ref[...] = _log_prob(cos, mask)                             # lane-dense (1, tn)


def _round_up(x, m):
    return (x + m - 1) // m * m


def _vmem_budget_and_limit():
    """Per-generation working-set budget + explicit scoped-VMEM limit."""
    cap = 64 << 20                      # conservative fallback (v7x per-TC VMEM)
    try:
        cap = int(pltpu.get_tpu_info().vmem_capacity_bytes)
    except Exception:
        pass
    # ~5/8 of physical, capped at 48 MiB: -> ~40 MiB on v7x (64 MiB VMEM),
    # 48 MiB on v5e/v6e (128 MiB).  Big class tiles amortize the ~0.35 us
    # per-grid-step overhead without risking spills / losing double-buffering.
    budget = min(cap * 5 // 8, 48 << 20)
    # Raise the scoped-VMEM limit explicitly (v5e default is only 16 MiB).
    limit = min(cap * 7 // 8, budget + (16 << 20))
    return budget, limit


def _per_class_bytes(bs, dim, itemsize, dim_major):
    """Approximate VMEM bytes per class (lane column), incl. lane/sublane
    padding, double-buffered inputs and the in-kernel f32 working copies."""
    sub = 8 * max(1, 4 // itemsize)            # sublane packing for native dtype
    if dim_major:                              # semantic tile [bs, dim, tn]
        d_in = _round_up(dim, sub)             # native layout: dim on sublanes
        d_f32 = _round_up(dim, 8)              # f32 working copies
    else:                                      # semantic tile [bs, tn, dim]
        d_in = _round_up(dim, 128)             # dim on lanes -> pad to 128
        d_f32 = _round_up(dim, 128)
    sem = bs * d_in * itemsize * 2             # double-buffered input stream
    sem += bs * d_f32 * 4 * 2                  # f32 upcast + one fused temp
    pro = d_in * itemsize * 2 + d_f32 * 4 * 2  # prototypes (dbl-buf + f32)
    epi = _round_up(bs, 8) * 4 * 8 + 64        # target + [bs,tn] epilogue temps
    return sem + pro + epi


def _pick_tile_n(n, per_class, budget):
    """Largest lane-dense class tile fitting the budget; >=2 grid steps when
    n >= 256 so the 'parallel' axis actually shards across v7x's two TCs."""
    if n <= 128:
        return n                                   # single full-extent block
    tn = max(128, (budget // per_class) // 128 * 128)
    tn = min(tn, (n // 128) * 128)
    if n >= 256:
        tn = min(tn, max(128, (n // 2) // 128 * 128))
    return int(tn)


def semantic2prototype_con_loss(semantic_embed, proto_embed, target,
                                temperature=0.07, tile_n=None,
                                dim_major_inputs=False):
    """semantic_embed: [bs, n, dim] (or [bs, dim, n] if dim_major_inputs);
    proto_embed: [n, dim] / [1, n, dim] (or [dim, n] / [1, dim, n]);
    target: [bs, n] binary {0,1} pos_mask.  Returns the scalar loss.
    bf16 inputs are supported (single in-kernel upcast; halves HBM traffic)."""
    if proto_embed.ndim == 3:
        proto_embed = proto_embed[0]

    if dim_major_inputs:
        bs, dim, n = semantic_embed.shape
        dim_major = True
        sem, proto = semantic_embed, proto_embed          # [bs, dim, n], [dim, n]
    else:
        bs, n, dim = semantic_embed.shape
        dim_major = dim < 128
        if dim_major:
            # TODO(synk): ideally the producer emits dim-major activations so
            # this one-time transpose (an extra HBM pass in XLA) disappears.
            sem = jnp.swapaxes(semantic_embed, 1, 2)      # [bs, dim, n]
            proto = proto_embed.T                          # [dim, n]
        else:
            sem, proto = semantic_embed, proto_embed

    itemsize = jnp.dtype(sem.dtype).itemsize
    budget, vmem_limit = _vmem_budget_and_limit()
    per_class = _per_class_bytes(bs, dim, itemsize, dim_major)
    tn = tile_n if tile_n is not None else _pick_tile_n(n, per_class, budget)
    grid = (pl.cdiv(n, tn),)

    inv_temp = 1.0 / temperature
    if dim_major:
        kernel = functools.partial(_sem2pro_kernel_dim_major, inv_temp=inv_temp)
        in_specs = [
            pl.BlockSpec((bs, dim, tn), lambda i: (0, 0, i)),   # semantic slab
            pl.BlockSpec((dim, tn), lambda i: (0, i)),          # prototypes
            pl.BlockSpec((bs, tn), lambda i: (0, i)),           # pos_mask
        ]
    else:
        kernel = functools.partial(_sem2pro_kernel_class_major, inv_temp=inv_temp)
        in_specs = [
            pl.BlockSpec((bs, tn, dim), lambda i: (0, i, 0)),
            pl.BlockSpec((tn, dim), lambda i: (i, 0)),
            pl.BlockSpec((bs, tn), lambda i: (0, i)),
        ]

    log_prob = pl.pallas_call(
        kernel,
        out_shape=jax.ShapeDtypeStruct((1, n), jnp.float32),
        grid=grid,
        in_specs=in_specs,
        out_specs=pl.BlockSpec((1, tn), lambda i: (0, i)),      # per-class partials
        compiler_params=pltpu.CompilerParams(
            dimension_semantics=("parallel",),
            vmem_limit_bytes=int(vmem_limit)),
    )(sem, proto, target)

    pos_sum = jnp.sum(target.astype(jnp.float32))
    # TODO(synk): the PyTorch else-branch (`log_prob.meam()`) is an upstream
    # typo that would raise; only the pos_mask.sum() != 0 path is implemented,
    # with a divide-by-zero guard instead of an error.
    return -jnp.sum(log_prob) / jnp.where(pos_sum == 0.0, 1.0, pos_sum)


def _reference_loss(semantic_embed, proto_embed, target, temperature=0.07):
    """Pure-JAX re-implementation of the PyTorch forward (for verification)."""
    if proto_embed.ndim == 3:
        proto_embed = proto_embed[0]
    s = semantic_embed.astype(jnp.float32)                     # [bs, n, dim]
    p = proto_embed.astype(jnp.float32)                        # [n, dim]
    mask = target.astype(jnp.float32).T                        # [n, bs]
    dot = jnp.einsum("bnd,nd->nb", s, p)                       # [n, bs]
    s_norm = jnp.maximum(jnp.linalg.norm(s, axis=-1).T, _COS_EPS)          # [n, bs]
    p_norm = jnp.maximum(jnp.linalg.norm(p, axis=-1)[:, None], _COS_EPS)   # [n, 1]
    cos = dot / (s_norm * p_norm) / temperature
    cos = cos - jnp.max(cos, axis=-1, keepdims=True)
    neg = jnp.sum(jnp.exp(cos), axis=-1, keepdims=True)
    neg = jnp.log(jnp.where(neg <= 0.0, 1.0, neg))
    pos = jnp.sum(jnp.exp(cos * mask) * mask, axis=-1, keepdims=True)
    pos = jnp.log(jnp.where(pos <= 0.0, 1.0, pos))
    return -jnp.sum(pos - neg) / jnp.sum(mask)


if __name__ == "__main__":
    key = jax.random.PRNGKey(0)
    keys = jax.random.split(key, 9)

    # 1) Small shape consistent with the module: batch=2, classes=8, hidden=32.
    bs, n, dim = 2, 8, 32
    sem = jax.random.normal(keys[0], (bs, n, dim), dtype=jnp.float32)
    proto = jax.random.normal(keys[1], (n, dim), dtype=jnp.float32)
    tgt = jax.random.bernoulli(keys[2], 0.5, (bs, n)).astype(jnp.float32)
    tgt = tgt.at[0, 0].set(1.0)                 # guarantee pos_mask.sum() != 0
    loss = jax.block_until_ready(semantic2prototype_con_loss(sem, proto, tgt))
    ref = _reference_loss(sem, proto, tgt)
    assert jnp.allclose(loss, ref, rtol=1e-4, atol=1e-5), (loss, ref)

    # 2) Multi-grid-step dim-major path (dim < 128 -> classes on lanes).
    bs2, n2, dim2 = 2, 384, 32
    sem2 = jax.random.normal(keys[3], (bs2, n2, dim2), dtype=jnp.float32)
    proto2 = jax.random.normal(keys[4], (n2, dim2), dtype=jnp.float32)
    tgt2 = jax.random.bernoulli(keys[5], 0.5, (bs2, n2)).astype(jnp.float32)
    tgt2 = tgt2.at[0, 0].set(1.0)
    loss2 = jax.block_until_ready(
        semantic2prototype_con_loss(sem2, proto2, tgt2, tile_n=128))
    ref2 = _reference_loss(sem2, proto2, tgt2)
    assert jnp.allclose(loss2, ref2, rtol=1e-4, atol=1e-5), (loss2, ref2)

    # 3) bf16 inputs (half the HBM traffic; single in-kernel upcast to f32).
    loss3 = jax.block_until_ready(
        semantic2prototype_con_loss(sem2.astype(jnp.bfloat16),
                                    proto2.astype(jnp.bfloat16), tgt2))
    ref3 = _reference_loss(sem2.astype(jnp.bfloat16),
                           proto2.astype(jnp.bfloat16), tgt2)
    assert jnp.allclose(loss3, ref3, rtol=1e-3, atol=1e-3), (loss3, ref3)

    # 4) Lane-dense class-major path (dim >= 128 -> no transpose, auto tiling).
    bs4, n4, dim4 = 2, 256, 128
    sem4 = jax.random.normal(keys[6], (bs4, n4, dim4), dtype=jnp.float32)
    proto4 = jax.random.normal(keys[7], (n4, dim4), dtype=jnp.float32)
    tgt4 = jax.random.bernoulli(keys[8], 0.5, (bs4, n4)).astype(jnp.float32)
    tgt4 = tgt4.at[0, 0].set(1.0)
    loss4 = jax.block_until_ready(semantic2prototype_con_loss(sem4, proto4, tgt4))
    ref4 = _reference_loss(sem4, proto4, tgt4)
    assert jnp.allclose(loss4, ref4, rtol=1e-4, atol=1e-5), (loss4, ref4)

    print("KERNEL_OK")
</pallas_src>

<mosaic_0001>
module attributes {stable_mosaic.version = 11 : i64} {
  func.func @_sem2pro_kernel_dim_major(%arg0: i32, %arg1: memref<2x32x8xf32, #tpu.memory_space<vmem>>, %arg2: memref<32x8xf32, #tpu.memory_space<vmem>>, %arg3: memref<2x8xf32, #tpu.memory_space<vmem>>, %arg4: memref<1x8xf32, #tpu.memory_space<vmem>>) attributes {dimension_semantics = [#tpu.dimension_semantics<parallel>], iteration_bounds = array<i64: 1>, scalar_prefetch = 0 : i64, scratch_operands = 0 : i64, tpu.core_type = #tpu.core_type<tc>, window_params = [{transform_indices = @transform_0, window_bounds = array<i64: 2, 32, 8>}, {transform_indices = @transform_1, window_bounds = array<i64: 32, 8>}, {transform_indices = @transform_2, window_bounds = array<i64: 2, 8>}, {transform_indices = @transform_3, window_bounds = array<i64: 1, 8>}]} {
    %c0 = arith.constant 0 : index
    %c0_0 = arith.constant 0 : index
    %c0_1 = arith.constant 0 : index
    %0 = vector.load %arg1[%c0, %c0_0, %c0_1] : memref<2x32x8xf32, #tpu.memory_space<vmem>>, vector<2x32x8xf32>
    %c0_2 = arith.constant 0 : index
    %c0_3 = arith.constant 0 : index
    %1 = vector.load %arg2[%c0_2, %c0_3] : memref<32x8xf32, #tpu.memory_space<vmem>>, vector<32x8xf32>
    %c0_4 = arith.constant 0 : index
    %c0_5 = arith.constant 0 : index
    %2 = vector.load %arg3[%c0_4, %c0_5] : memref<2x8xf32, #tpu.memory_space<vmem>>, vector<2x8xf32>
    %3 = arith.mulf %1, %1 : vector<32x8xf32>
    %cst = arith.constant dense<0.000000e+00> : vector<8xf32>
    %4 = vector.multi_reduction <add>, %3, %cst [0] : vector<32x8xf32> to vector<8xf32>
    %5 = vector.shape_cast %4 : vector<8xf32> to vector<1x8xf32>
    %cst_6 = arith.constant 1.000000e-16 : f32
    %6 = vector.broadcast %cst_6 : f32 to vector<1x8xf32>
    %7 = arith.maximumf %5, %6 : vector<1x8xf32>
    %8 = math.rsqrt %7 : vector<1x8xf32>
    %9 = vector.broadcast %8 : vector<1x8xf32> to vector<32x8xf32>
    %10 = arith.mulf %1, %9 : vector<32x8xf32>
    %11 = vector.shape_cast %10 : vector<32x8xf32> to vector<1x32x8xf32>
    %12 = vector.broadcast %11 : vector<1x32x8xf32> to vector<2x32x8xf32>
    %13 = arith.mulf %0, %12 : vector<2x32x8xf32>
    %cst_7 = arith.constant dense<0.000000e+00> : vector<2x8xf32>
    %14 = vector.multi_reduction <add>, %13, %cst_7 [1] : vector<2x32x8xf32> to vector<2x8xf32>
    %15 = arith.mulf %0, %0 : vector<2x32x8xf32>
    %cst_8 = arith.constant dense<0.000000e+00> : vector<2x8xf32>
    %16 = vector.multi_reduction <add>, %15, %cst_8 [1] : vector<2x32x8xf32> to vector<2x8xf32>
    %cst_9 = arith.constant 1.000000e-16 : f32
    %17 = vector.broadcast %cst_9 : f32 to vector<2x8xf32>
    %18 = arith.maximumf %16, %17 : vector<2x8xf32>
    %19 = math.rsqrt %18 : vector<2x8xf32>
    %20 = arith.mulf %14, %19 : vector<2x8xf32>
    %cst_10 = arith.constant 14.2857141 : f32
    %21 = vector.broadcast %cst_10 : f32 to vector<2x8xf32>
    %22 = arith.mulf %20, %21 : vector<2x8xf32>
    %cst_11 = arith.constant dense<0xFF800000> : vector<8xf32>
    %23 = vector.multi_reduction <maximumf>, %22, %cst_11 [0] : vector<2x8xf32> to vector<8xf32>
    %24 = vector.shape_cast %23 : vector<8xf32> to vector<1x8xf32>
    %25 = vector.broadcast %24 : vector<1x8xf32> to vector<2x8xf32>
    %26 = arith.subf %22, %25 : vector<2x8xf32>
    %27 = math.exp %26 : vector<2x8xf32>
    %cst_12 = arith.constant dense<0.000000e+00> : vector<8xf32>
    %28 = vector.multi_reduction <add>, %27, %cst_12 [0] : vector<2x8xf32> to vector<8xf32>
    %29 = vector.shape_cast %28 : vector<8xf32> to vector<1x8xf32>
    %cst_13 = arith.constant 0.000000e+00 : f32
    %30 = vector.broadcast %cst_13 : f32 to vector<1x8xf32>
    %31 = arith.cmpf ole, %29, %30 : vector<1x8xf32>
    %cst_14 = arith.constant 1.000000e+00 : f32
    %32 = vector.broadcast %cst_14 : f32 to vector<1x8xf32>
    %33 = arith.select %31, %32, %29 : vector<1x8xi1>, vector<1x8xf32>
    %34 = math.log %33 : vector<1x8xf32>
    %35 = arith.mulf %27, %2 : vector<2x8xf32>
    %cst_15 = arith.constant dense<0.000000e+00> : vector<8xf32>
    %36 = vector.multi_reduction <add>, %35, %cst_15 [0] : vector<2x8xf32> to vector<8xf32>
    %37 = vector.shape_cast %36 : vector<8xf32> to vector<1x8xf32>
    %cst_16 = arith.constant 0.000000e+00 : f32
    %38 = vector.broadcast %cst_16 : f32 to vector<1x8xf32>
    %39 = arith.cmpf ole, %37, %38 : vector<1x8xf32>
    %cst_17 = arith.constant 1.000000e+00 : f32
    %40 = vector.broadcast %cst_17 : f32 to vector<1x8xf32>
    %41 = arith.select %39, %40, %37 : vector<1x8xi1>, vector<1x8xf32>
    %42 = math.log %41 : vector<1x8xf32>
    %43 = arith.subf %42, %34 : vector<1x8xf32>
    %c0_18 = arith.constant 0 : index
    %c0_19 = arith.constant 0 : index
    %44 = vector.load %arg4[%c0_18, %c0_19] : memref<1x8xf32, #tpu.memory_space<vmem>>, vector<1x8xf32>
    tpu.vector_store %arg4[%c0_18, %c0_19], %43 {strides = array<i32>} : memref<1x8xf32, #tpu.memory_space<vmem>>, vector<1x8xf32>,
    return
  }
  func.func @transform_0(%arg0: i32) -> (i32, i32, i32) {
    %c0_i32 = arith.constant 0 : i32
    %c0_i32_0 = arith.constant 0 : i32
    %c0_i32_1 = arith.constant 0 : i32
    return %c0_i32, %c0_i32_0, %arg0 : i32, i32, i32
  }
  func.func @transform_1(%arg0: i32) -> (i32, i32) {
    %c0_i32 = arith.constant 0 : i32
    %c0_i32_0 = arith.constant 0 : i32
    return %c0_i32, %arg0 : i32, i32
  }
  func.func @transform_2(%arg0: i32) -> (i32, i32) {
    %c0_i32 = arith.constant 0 : i32
    %c0_i32_0 = arith.constant 0 : i32
    return %c0_i32, %arg0 : i32, i32
  }
  func.func @transform_3(%arg0: i32) -> (i32, i32) {
    %c0_i32 = arith.constant 0 : i32
    %c0_i32_0 = arith.constant 0 : i32
    return %c0_i32, %arg0 : i32, i32
  }
}

</mosaic_0001>

<bundles_post_ra>
// kernel: tpu_custom_call.1
= control target key start
LH: loop header
LB: loop body
LE: loop exit
PB: predicated region body
PF: predicated region fallthrough
CT: control target
= control target key end

     0   :  { %8 = vsyncpa [#allocation3], 0  ;;  %vm32_vm0 = vcmask 64512   ;;  %vm140_vm1 = vcmask 1041409   ;;  %vm143_vm2 = vcmask 58368   ;;  %vm178_vm5 = vcmask 57344   ;;  %s362_s0 = inlined_call_operand.vmem [shape: f32[2,32,8], index: 0, kind: input, shape index: {}]   ;;  %s363_s1 = inlined_call_operand.vmem [shape: f32[32,8], index: 1, kind: input, shape index: {}]   ;;  %s364_s2 = inlined_call_operand.vmem [shape: f32[2,8], index: 2, kind: input, shape index: {}]   ;;  %s365_s3 = inlined_call_operand.hbm [shape: f32[1,8], index: 3, kind: output, shape index: {}]  }
   0x1   :  { %v257_v0 = vld [vmem:[%s362_s0] sm:$0xff]  ;;  %v262_v1 = vld [vmem:[%s362_s0 + $0x8] sm:$0xff]  ;;  %v267_v2 = vld [vmem:[%s362_s0 + $0x10] sm:$0xff] }
   0x2   :  { %v272_v3 = vld [vmem:[%s362_s0 + $0x20] sm:$0xff]  ;;  %v86_v4 = vmul.f32 %v257_v0, %v257_v0  ;;  %v87_v5 = vmul.f32 %v262_v1, %v262_v1  ;;  %v281_v6 = vld [vmem:[%s362_s0 + $0x18] sm:$0xff]  ;;  %v286_v7 = vld [vmem:[%s362_s0 + $0x28] sm:$0xff]  ;;  %v88_v13 = vmul.f32 %v267_v2, %v267_v2 }
   0x3   :  { %v291_v8 = vld [vmem:[%s362_s0 + $0x30] sm:$0xff]  ;;  %v90_v9 = vmul.f32 %v272_v3, %v272_v3  ;;  %v23_v10 = vld [vmem:[%s363_s1] sm:$0xff]  ;;  %v24_v11 = vld [vmem:[%s363_s1 + $0x8] sm:$0xff]  ;;  %v91_v14 = vmul.f32 %v286_v7, %v286_v7  ;;  %v89_v24 = vmul.f32 %v281_v6, %v281_v6 }
   0x4   :  { %v25_v12 = vld [vmem:[%s363_s1 + $0x10] sm:$0xff]  ;;  %v92_v15 = vmul.f32 %v291_v8, %v291_v8  ;;  %v94_v16 = vsel %vm32_vm0, %v86_v4, 0.0  ;;  %v22_v17 = vld [vmem:[%s362_s0 + $0x38] sm:$0xff]  ;;  %v28_v19 = vmul.f32 %v23_v10, %v23_v10  ;;  %v29_v20 = vmul.f32 %v24_v11, %v24_v11 }
   0x5   :  { %v26_v18 = vld [vmem:[%s363_s1 + $0x18] sm:$0xff]  ;;  %v30_v21 = vmul.f32 %v25_v12, %v25_v12  ;;  %v95_v22 = vsel %vm32_vm0, %v87_v5, 0.0  ;;  %v107_v28 = vsel %vm32_vm0, %v90_v9, 0.0  ;;  %v93_v30 = vmul.f32 %v22_v17, %v22_v17 }
   0x6   :  { %v31_v23 = vmul.f32 %v26_v18, %v26_v18  ;;  %v33_v25 = vsel %vm32_vm0, %v28_v19, 0.0  ;;  %v34_v26 = vsel %vm32_vm0, %v29_v20, 0.0  ;;  %v96_v31 = vadd.f32 %v95_v22, %v94_v16 }
   0x7   :  { %v36_v27 = vsel %vm32_vm0, %v30_v21, 0.0  ;;  %v35_v29 = vadd.f32 %v34_v26, %v33_v25  ;;  %v108_v32 = vsel %vm32_vm0, %v91_v14, 0.0  ;;  %v97_v34 = vsel %vm32_vm0, %v88_v13, 0.0 }
   0x8   :  { %v38_v33 = vsel %vm32_vm0, %v31_v23, 0.0  ;;  %v109_v35 = vadd.f32 %v108_v32, %v107_v28  ;;  %v110_v36 = vsel %vm32_vm0, %v92_v15, 0.0  ;;  %v98_v39 = vadd.f32 %v97_v34, %v96_v31 }
   0x9   :  { %v37_v37 = vadd.f32 %v36_v27, %v35_v29  ;;  %v99_v41 = vsel %vm32_vm0, %v89_v24, 0.0  ;;  %v112_v42 = vsel %vm32_vm0, %v93_v30, 0.0 }
   0xa   :  { %v111_v40 = vadd.f32 %v110_v36, %v109_v35  ;;  %v100_v45 = vadd.f32 %v99_v41, %v98_v39 }
   0xb   :  { %v39_v38 = vadd.f32 %v38_v33, %v37_v37 }
   0xc   :  { %v113_v46 = vadd.f32 %v112_v42, %v111_v40  ;;  %v101_v49 = vrot.slane %v100_v45, 4 }
   0xd   :  { %v40_v43 = vrot.slane %v39_v38, 4 }
   0xe   :  { %v114_v50 = vrot.slane %v113_v46, 4  ;;  %v102_v53 = vadd.f32 %v101_v49, %v100_v45 }
   0xf   :  { %v41_v44 = vadd.f32 %v40_v43, %v39_v38 }
  0x10   :  { %v115_v54 = vadd.f32 %v114_v50, %v113_v46  ;;  %v103_v56 = vrot.slane %v102_v53, 2 }
  0x11   :  { %v42_v47 = vrot.slane %v41_v44, 2 }
  0x12   :  { %v116_v57 = vrot.slane %v115_v54, 2  ;;  %v104_v58 = vadd.f32 %v103_v56, %v102_v53 }
  0x13   :  { %v43_v48 = vadd.f32 %v42_v47, %v41_v44 }
  0x14   :  { %v117_v59 = vadd.f32 %v116_v57, %v115_v54  ;;  %v105_v60 = vrot.slane %v104_v58, 1  ;;  %v27_v54 = vld [vmem:[%s364_s2] sm:$0x3]  ;;  %s233_s2 = smov [#allocation2]  }
  0x15   :  { %v44_v51 = vrot.slane %v43_v48, 1  ;;  %s186_s9 = sshll.u32 %s233_s2, 4  ;;  %s187_s9 = int_to_ptr.vmem [resolvable:$true] %s186_s9 }
  0x16   :  { %v118_v61 = vrot.slane %v117_v59, 1  ;;  %v106_v13 = vadd.f32 %v105_v60, %v104_v58  ;;  %s209_s10 = scalar_lea.vmem %s187_s9, 16  ;;  %s213_s11 = scalar_lea.vmem %s187_s9, 32 }
  0x17   :  { %v45_v52 = vadd.f32 %v44_v51, %v43_v48  ;;  %p210_p0 = scmp.ne.s32.totalorder %s187_s9, %s209_s10  ;;  %p214_p1 = scmp.lt.s32.totalorder %s187_s9, %s187_s9 }
  0x18   :  { %v119_v14 = vadd.f32 %v118_v61, %v117_v59  ;;  %p215_p2 = scmp.lt.s32.totalorder %s213_s11, %s209_s10 }
  0x19   :  { %v46_v55 = vmax.f32 %v45_v52, 1e-16 }
  0x1a   :  { %p216_p3 = por %p215_p2, %p214_p1 }
  0x1b   :  { %195 = vrsqrt.f32 %v46_v55  ;;  %v156_v55 = vrot.slane %v27_v54, 1 }
  0x1c   :  { %p217_p4 = pnand %p216_p3, %p210_p0 }
  0x25   :  { %v196_v62 = vpop.eup %195 }
  0x26   :  { %v48_v63 = vmul.f32 %v196_v62, %v23_v10  ;;  %v49_v4 = vmul.f32 %v196_v62, %v24_v11  ;;  %v50_v5 = vmul.f32 %v196_v62, %v25_v12  ;;  %v51_v9 = vmul.f32 %v196_v62, %v26_v18 }
  0x28   :  { %v52_v15 = vmul.f32 %v48_v63, %v257_v0  ;;  %v53_v16 = vmul.f32 %v49_v4, %v262_v1  ;;  %v54_v19 = vmul.f32 %v50_v5, %v267_v2  ;;  %v55_v20 = vmul.f32 %v51_v9, %v281_v6 }
  0x29   :  { %v56_v21 = vmul.f32 %v48_v63, %v272_v3  ;;  %v57_v22 = vmul.f32 %v49_v4, %v286_v7  ;;  %v58_v23 = vmul.f32 %v50_v5, %v291_v8  ;;  %v59_v10 = vmul.f32 %v51_v9, %v22_v17 }
  0x2a   :  { %v60_v11 = vsel %vm32_vm0, %v52_v15, 0.0  ;;  %v61_v12 = vsel %vm32_vm0, %v53_v16, 0.0  ;;  %v63_v18 = vsel %vm32_vm0, %v54_v19, 0.0  ;;  %v65_v3 = vsel %vm32_vm0, %v55_v20, 0.0 }
  0x2b   :  { %v62_v0 = vadd.f32 %v61_v12, %v60_v11  ;;  %v73_v1 = vsel %vm32_vm0, %v56_v21, 0.0  ;;  %v74_v2 = vsel %vm32_vm0, %v57_v22, 0.0  ;;  %v76_v6 = vsel %vm32_vm0, %v58_v23, 0.0 }
  0x2c   :  { %v75_v24 = vadd.f32 %v74_v2, %v73_v1  ;;  %v120_v7 = vmax.f32 %v106_v13, 1e-16  ;;  %v78_v8 = vsel %vm32_vm0, %v59_v10, 0.0  ;;  %v121_v17 = vmax.f32 %v119_v14, 1e-16 }
  0x2d   :  { %v64_v25 = vadd.f32 %v63_v18, %v62_v0 }
  0x2e   :  { %v77_v26 = vadd.f32 %v76_v6, %v75_v24  ;;  %197 = vrsqrt.f32 %v120_v7 }
  0x2f   :  { %v66_v27 = vadd.f32 %v65_v3, %v64_v25  ;;  %199 = vrsqrt.f32 %v121_v17 }
  0x30   :  { %v79_v28 = vadd.f32 %v78_v8, %v77_v26 }
  0x31   :  { %v67_v29 = vrot.slane %v66_v27, 4 }
  0x32   :  { %v80_v30 = vrot.slane %v79_v28, 4 }
  0x33   :  { %v68_v31 = vadd.f32 %v67_v29, %v66_v27 }
  0x34   :  { %v81_v32 = vadd.f32 %v80_v30, %v79_v28 }
  0x35   :  { %v69_v33 = vrot.slane %v68_v31, 2 }
  0x36   :  { %v82_v34 = vrot.slane %v81_v32, 2 }
  0x37   :  { %v70_v35 = vadd.f32 %v69_v33, %v68_v31 }
  0x38   :  { %v83_v36 = vadd.f32 %v82_v34, %v81_v32  ;;  %v198_v38 = vpop.eup %197 }
  0x39   :  { %v71_v37 = vrot.slane %v70_v35, 1  ;;  %v200_v40 = vpop.eup %199 }
  0x3a   :  { %v84_v39 = vrot.slane %v83_v36, 1 }
  0x3b   :  { %v72_v41 = vadd.f32 %v71_v37, %v70_v35 }
  0x3c   :  { %v85_v42 = vadd.f32 %v84_v39, %v83_v36 }
  0x3d   :  { %v124_v43 = vmul.f32 %v198_v38, %v72_v41 }
  0x3e   :  { %v125_v44 = vmul.f32 %v200_v40, %v85_v42 }
  0x3f   :  { %v126_v45 = vmul.f32 14.285714, %v124_v43 }
  0x40   :  { %v127_v46 = vmul.f32 14.285714, %v125_v44 }
  0x41   :  { %v128_v47 = vsel %vm32_vm0, %v126_v45, -inf }
  0x42   :  { %v129_v48 = vsel %vm32_vm0, %v127_v46, -inf }
  0x43   :  { %v130_v49 = vmax.f32 %v128_v47, %v129_v48 }
  0x45   :  { %v131_v50 = vsub.f32 %v126_v45, %v130_v49  ;;  %v132_v51 = vsub.f32 %v127_v46, %v130_v49 }
  0x47   :  { %v133_v52 = vmul.f32 1.442695, %v131_v50  ;;  %v135_v53 = vmul.f32 1.442695, %v132_v51 }
  0x49   :  { %201 = vpow2.f32 %v133_v52 }
  0x4a   :  { %203 = vpow2.f32 %v135_v53 }
  0x53   :  { %v202_v56 = vpop.eup %201 }
  0x54   :  { %v204_v57 = vpop.eup %203  ;;  %v159_v59 = vmul.f32 %v202_v56, %v27_v54 }
  0x55   :  { %v139_v58 = vrot.slane %v204_v57, 7  ;;  %v160_v60 = vmul.f32 %v204_v57, %v156_v55 }
  0x57   :  { %v141_v61 = vsel %vm140_vm1, %v139_v58, %v202_v56  ;;  %v163_v62 = vrot.slane %v160_v60, 7 }
  0x58   :  { %v144_v63 = vsel %vm143_vm2, %v141_v61, 0.0 }
  0x59   :  { %v145_v4 = vrot.slane %v144_v63, 4  ;;  %v164_v5 = vsel %vm140_vm1, %v163_v62, %v159_v59 }
  0x5a   :  { %v166_v9 = vsel %vm143_vm2, %v164_v5, 0.0 }
  0x5b   :  { %v146_v13 = vadd.f32 %v145_v4, %v144_v63  ;;  %v167_v14 = vrot.slane %v166_v9, 4 }
  0x5d   :  { %v147_v15 = vrot.slane %v146_v13, 2  ;;  %v168_v16 = vadd.f32 %v167_v14, %v166_v9 }
  0x5f   :  { %v148_v19 = vadd.f32 %v147_v15, %v146_v13  ;;  %v169_v20 = vrot.slane %v168_v16, 2 }
  0x61   :  { %v149_v21 = vrot.slane %v148_v19, 1  ;;  %v170_v22 = vadd.f32 %v169_v20, %v168_v16 }
  0x63   :  { %v150_v23 = vadd.f32 %v149_v21, %v148_v19  ;;  %v171_v10 = vrot.slane %v170_v22, 1 }
  0x65   :  { %vm151_vm3 = vcmp.le.f32.partialorder %v150_v23, 0.0  ;;  %v172_v11 = vadd.f32 %v171_v10, %v170_v22 }
  0x66   :  { %v152_v12 = vsel %vm151_vm3, 1.0, %v150_v23 }
  0x67   :  { %205 = vlog2.f32 %v152_v12  ;;  %vm173_vm4 = vcmp.le.f32.partialorder %v172_v11, 0.0 }
  0x68   :  { %v174_v18 = vsel %vm173_vm4, 1.0, %v172_v11 }
  0x69   :  { %207 = vlog2.f32 %v174_v18 }
  0x71   :  { %v206_v0 = vpop.eup %205 }
  0x72   :  { %v154_v1 = vmul.f32 0.6931472, %v206_v0 }
  0x73   :  { %v208_v2 = vpop.eup %207 }
  0x74   :  { %v176_v6 = vmul.f32 0.6931472, %v208_v2 }
  0x76   :  { %v177_v3 = vsub.f32 %v176_v6, %v154_v1 }
  0x78   :  { %179 = vst.msk [vmem:[#allocation2] sm:$0x1] %vm178_vm5, %v177_v3 }
  0x79   :  { %220 = shalt.err (!%p217_p4)
}
  0x7a   :  { %s221_s14 = scalar_lea.hbm %s365_s3, 16 }
  0x7b   :  { %p222_p5 = scmp.ne.s32.totalorder %s365_s3, %s221_s14  ;;  %p225_p6 = scmp.lt.u32.totalorder %s221_s14, %s365_s3 }
  0x7d   :  { %p227_p7 = pnand %p225_p6, %p222_p5 }
  0x7f   :  { %230 = shalt.err (!%p227_p7)
}
  0x80   :  { %189 = dma.vmem_to_hbm [thread:$0]  %s187_s9, 16, %s365_s3, [#allocation3]  }
  0x81   :  { %231 = dma.done.wait [#allocation3], 16  }
  0x82   :  { %232 = vsyncadd [#allocation3], 4294967280 }
  0x83   :  { %193 = vsyncpa [#allocation3], 1 }

</bundles_post_ra>
